<compile_context>
chip_gen: v5e
topology: v5e:2x2
jax: 0.10.0
libtpu: 0.0.40
codegen_flags: <defaults>
</compile_context>

<pallas_src>
import functools

import jax
import jax.numpy as jnp
import numpy as np
from jax import lax
from jax.experimental import pallas as pl
from jax.experimental.pallas import tpu as pltpu


def att_layer_kernel(x_ref, pm_ref, lpm_ref, bias_ref,
                     wqkv_ref, bqkv_ref, wo_ref, bo_ref,
                     o_ref, *, sec, use_bf16):
    # One packed slab (Bt samples concatenated along lanes) per grid step.
    x = x_ref[0]            # (Cq, S)    S = Bt * L
    pm = pm_ref[0]          # (1, S)     binary padding-mask row
    lpm = lpm_ref[0]        # (1, S)     log(pm + 1e-6), precomputed in wrapper
    bias = bias_ref[...]    # (S, S)     0 on same-sample blocks, -1e30 off (resident)

    wqkv = wqkv_ref[...]    # (3*sec, Cq)  q rows pre-scaled by 1/sqrt(cq); q/k/v
    bqkv = bqkv_ref[...]    # (3*sec, 1)   sections zero-padded to `sec` (8-aligned) rows
    wo = wo_ref[...]        # (v_dim, sec) columns zero-padded to match the v section
    bo = bo_ref[...]        # (v_dim, 1)

    S = x.shape[1]

    # Fused 1x1-conv q/k/v projection: one wide MXU matmul.
    qkv = jnp.dot(wqkv, x, preferred_element_type=jnp.float32) + bqkv
    q = qkv[0:sec]              # sublane-aligned (free) slices; padded rows are zero
    k = qkv[sec:2 * sec]
    v = qkv[2 * sec:3 * sec]

    # energy[a, b] = sum_c q[c, a] * k[c, b]  (q^T k; transpose folded into MXU feed).
    energy = lax.dot_general(q, k, (((0,), (0,)), ((), ())),
                             preferred_element_type=jnp.float32)     # (S, S)

    # Single additive pass over (S,S): padding-mask log-bias + block-diag sample bias.
    att = energy + lpm + bias
    att_max = jnp.max(att, axis=-1, keepdims=True)
    p = jnp.exp(att - att_max)   # cross-sample entries: exp(-1e30 - max) == 0 exactly

    # Mask + softmax denominator folded out of the (S,S) domain:
    #   out[c, a] = (sum_b v[c,b]*pm[b]*p[a,b]) / (sum_b p[a,b])
    vm = v * pm                                                    # (sec, S)
    ones_row = jnp.ones((1, S), jnp.float32)
    if use_bf16:
        # bf16 operands for the deep-K (K=S) matmuls; f32 accumulation (v6e/v7x MXU).
        p_mm = p.astype(jnp.bfloat16)
        vm_mm = vm.astype(jnp.bfloat16)
        ones_row = ones_row.astype(jnp.bfloat16)
    else:
        p_mm, vm_mm = p, vm

    dn = (((1,), (1,)), ((), ()))     # contract LHS lanes with dim 1 of p (i.e. p^T)
    num = lax.dot_general(vm_mm, p_mm, dn,
                          preferred_element_type=jnp.float32)      # (sec, S)
    den = lax.dot_general(ones_row, p_mm, dn,
                          preferred_element_type=jnp.float32)      # (1, S) row-sums^T
    out = num * pl.reciprocal(den, approx=False)                   # (sec, S)

    # conv_out(relu(out)), final mask multiply, single lane-dense store.
    out = jnp.maximum(out, 0.0)
    out = jnp.dot(wo, out, preferred_element_type=jnp.float32) + bo
    o_ref[0] = (out * pm).astype(o_ref.dtype)


def att_layer_forward(x1, mask, params, *, block_batch=2, use_bf16_matmul=False):
    """x1: (B, q_dim, L), mask: (B, Cm, L). Returns (B, v_dim, L)."""
    B, Cq, L = x1.shape
    wq, bq = params["wq"], params["bq"]
    wk, bk = params["wk"], params["bk"]
    wv, bv = params["wv"], params["bv"]
    wo, bo = params["wo"], params["bo"]
    cq = wq.shape[0]
    cv = wv.shape[0]
    v_dim = wo.shape[0]

    # Sublane-aligned section size (multiple of 8) for the fused q/k/v operand.
    sec = max(8, -(-max(cq, cv) // 8) * 8)

    def pad_rows(w, b, rows):
        pad = rows - w.shape[0]
        if pad:
            w = jnp.concatenate([w, jnp.zeros((pad, w.shape[1]), w.dtype)], 0)
            b = jnp.concatenate([b, jnp.zeros((pad, 1), b.dtype)], 0)
        return w, b

    # Fold 1/sqrt(cq) into the query projection; fuse and 8-align the three sections.
    scale = np.float32(1.0 / np.sqrt(cq))
    wq_p, bq_p = pad_rows(wq * scale, bq * scale, sec)
    wk_p, bk_p = pad_rows(wk, bk, sec)
    wv_p, bv_p = pad_rows(wv, bv, sec)
    wqkv = jnp.concatenate([wq_p, wk_p, wv_p], axis=0)     # (3*sec, Cq)
    bqkv = jnp.concatenate([bq_p, bk_p, bv_p], axis=0)     # (3*sec, 1)
    wo_p = wo
    if sec > cv:
        wo_p = jnp.concatenate([wo, jnp.zeros((v_dim, sec - cv), wo.dtype)], axis=1)

    # Pad the batch to a multiple of the per-step block (padded samples: mask 0).
    Bt = block_batch
    B_pad = -(-B // Bt) * Bt
    mask_row = mask[:, 0:1, :].astype(jnp.float32)
    x_f = x1.astype(jnp.float32)
    if B_pad != B:
        pad = B_pad - B
        x_f = jnp.concatenate([x_f, jnp.zeros((pad, Cq, L), jnp.float32)], 0)
        mask_row = jnp.concatenate([mask_row, jnp.zeros((pad, 1, L), jnp.float32)], 0)

    G = B_pad // Bt
    S = Bt * L   # lane width of each slab (keep a multiple of 128)

    def pack(a):  # (B_pad, C, L) -> (G, C, Bt*L)
        C = a.shape[1]
        return a.reshape(G, Bt, C, L).transpose(0, 2, 1, 3).reshape(G, C, S)

    x_p = pack(x_f)
    pm_p = pack(mask_row)
    lpm_p = jnp.log(pm_p + 1e-6)     # precomputed; no per-step EUP log in kernel

    # Block-diagonal "same sample" bias, hoisted out of the kernel (resident input).
    seg = jnp.arange(S, dtype=jnp.int32) // L
    bias = jnp.where(seg[:, None] == seg[None, :], 0.0, -1e30).astype(jnp.float32)

    def full(arr):
        n = arr.ndim
        return pl.BlockSpec(arr.shape, lambda *_: (0,) * n)

    kern = functools.partial(att_layer_kernel, sec=sec, use_bf16=use_bf16_matmul)

    flops = 2 * G * (2 * S * S * sec + 3 * sec * Cq * S + v_dim * sec * S + S * S)
    bytes_accessed = 4 * (x_p.size + pm_p.size + lpm_p.size + bias.size + wqkv.size
                          + bqkv.size + wo_p.size + bo.size + G * v_dim * S)

    out_p = pl.pallas_call(
        kern,
        out_shape=jax.ShapeDtypeStruct((G, v_dim, S), jnp.float32),
        grid_spec=pltpu.PrefetchScalarGridSpec(
            num_scalar_prefetch=0,
            grid=(G,),
            in_specs=[
                pl.BlockSpec((1, Cq, S), lambda g: (g, 0, 0)),   # packed x slab
                pl.BlockSpec((1, 1, S), lambda g: (g, 0, 0)),    # packed mask
                pl.BlockSpec((1, 1, S), lambda g: (g, 0, 0)),    # packed log-mask
                pl.BlockSpec((S, S), lambda g: (0, 0)),          # resident block-diag bias
                full(wqkv), full(bqkv), full(wo_p), full(bo),
            ],
            out_specs=pl.BlockSpec((1, v_dim, S), lambda g: (g, 0, 0)),
        ),
        compiler_params=pltpu.CompilerParams(
            dimension_semantics=("parallel",),
            vmem_limit_bytes=32 * 1024 * 1024),
        cost_estimate=pl.CostEstimate(
            flops=flops,
            transcendentals=G * S * S,
            bytes_accessed=bytes_accessed),
    )(x_p, pm_p, lpm_p, bias, wqkv, bqkv, wo_p, bo)

    # Unpack (G, v_dim, Bt*L) -> (B, v_dim, L).
    out = out_p.reshape(G, v_dim, Bt, L).transpose(0, 2, 1, 3).reshape(B_pad, v_dim, L)
    return out[:B]


def att_layer_reference(x1, mask, params):
    """Pure-JAX reference of AttLayer._normal_self_att (encoder)."""
    wq, bq = params["wq"], params["bq"]
    wk, bk = params["wk"], params["bk"]
    wv, bv = params["wv"], params["bv"]
    wo, bo = params["wo"], params["bo"]

    q = jnp.einsum("oc,bcl->bol", wq, x1) + bq[None]
    k = jnp.einsum("oc,bcl->bol", wk, x1) + bk[None]
    v = jnp.einsum("oc,bcl->bol", wv, x1) + bv[None]

    pm = mask[:, 0:1, :].astype(jnp.float32)                  # (B, 1, L)
    c1 = q.shape[1]
    energy = jnp.einsum("bcq,bck->bqk", q, k) / np.sqrt(c1)
    att = energy + jnp.log(pm + 1e-6)
    att = jax.nn.softmax(att, axis=-1)
    att = att * pm
    out = jnp.einsum("bcl,bql->bcq", v, att)                  # bmm(v, att^T)
    out = jnp.maximum(out, 0.0)
    out = jnp.einsum("oc,bcl->bol", wo, out) + bo[None]
    return out * pm


if __name__ == "__main__":
    # Module config (synthetic): q_dim=k_dim=v_dim=16, r1=r2=r3=4 -> reduced dim 4,
    # stage='encoder', att_type='normal_att'.
    B, q_dim, L = 8, 16, 64
    r = 4
    cq = q_dim // r          # 4
    v_dim = q_dim
    cv = v_dim // r          # 4

    key = jax.random.PRNGKey(0)
    ks = jax.random.split(key, 10)

    params = {
        "wq": jax.random.normal(ks[0], (cq, q_dim), jnp.float32) * 0.1,
        "bq": jax.random.normal(ks[1], (cq, 1), jnp.float32) * 0.1,
        "wk": jax.random.normal(ks[2], (cq, q_dim), jnp.float32) * 0.1,
        "bk": jax.random.normal(ks[3], (cq, 1), jnp.float32) * 0.1,
        "wv": jax.random.normal(ks[4], (cv, v_dim), jnp.float32) * 0.1,
        "bv": jax.random.normal(ks[5], (cv, 1), jnp.float32) * 0.1,
        "wo": jax.random.normal(ks[6], (v_dim, cv), jnp.float32) * 0.1,
        "bo": jax.random.normal(ks[7], (v_dim, 1), jnp.float32) * 0.1,
    }

    x1 = jax.random.normal(ks[8], (B, q_dim, L), jnp.float32)
    # Binary padding masks with varying valid lengths.
    valid_len = jnp.array([L, L - 16, L - 8, L, L - 32, L - 4, L, L - 24])
    pos = jnp.arange(L)[None, :]
    mask = (pos < valid_len[:, None]).astype(jnp.float32)[:, None, :]   # (B,1,L)

    ref = att_layer_reference(x1, mask, params)

    # Exact path (f32 matmul operands): tight tolerance vs the f32 reference.
    out = att_layer_forward(x1, mask, params, block_batch=2, use_bf16_matmul=False)
    out = jax.block_until_ready(out)
    np.testing.assert_allclose(np.asarray(out), np.asarray(ref),
                               atol=1e-4, rtol=1e-4)

    # bf16-operand path for the deep-K matmuls (v6e/v7x MXU fast path): looser tol.
    out_bf16 = att_layer_forward(x1, mask, params, block_batch=2,
                                 use_bf16_matmul=True)
    out_bf16 = jax.block_until_ready(out_bf16)
    np.testing.assert_allclose(np.asarray(out_bf16), np.asarray(ref),
                               atol=3e-2, rtol=3e-2)

    print("KERNEL_OK")
</pallas_src>

<mosaic_0001>
module attributes {stable_mosaic.version = 11 : i64} {
  func.func @att_layer_kernel(%arg0: i32, %arg1: memref<1x16x128xf32, #tpu.memory_space<vmem>>, %arg2: memref<1x1x128xf32, #tpu.memory_space<vmem>>, %arg3: memref<1x1x128xf32, #tpu.memory_space<vmem>>, %arg4: memref<128x128xf32, #tpu.memory_space<vmem>>, %arg5: memref<24x16xf32, #tpu.memory_space<vmem>>, %arg6: memref<24x1xf32, #tpu.memory_space<vmem>>, %arg7: memref<16x8xf32, #tpu.memory_space<vmem>>, %arg8: memref<16x1xf32, #tpu.memory_space<vmem>>, %arg9: memref<1x16x128xf32, #tpu.memory_space<vmem>>) attributes {dimension_semantics = [#tpu.dimension_semantics<parallel>], iteration_bounds = array<i64: 4>, scalar_prefetch = 0 : i64, scratch_operands = 0 : i64, tpu.core_type = #tpu.core_type<tc>, window_params = [{transform_indices = @transform_0, window_bounds = array<i64: 1, 16, 128>}, {transform_indices = @transform_1, window_bounds = array<i64: 1, 1, 128>}, {transform_indices = @transform_2, window_bounds = array<i64: 1, 1, 128>}, {pipeline_mode = #tpu.pipeline_mode<synchronous>, transform_indices = @transform_3, window_bounds = array<i64: 128, 128>}, {pipeline_mode = #tpu.pipeline_mode<synchronous>, transform_indices = @transform_4, window_bounds = array<i64: 24, 16>}, {pipeline_mode = #tpu.pipeline_mode<synchronous>, transform_indices = @transform_5, window_bounds = array<i64: 24, 1>}, {pipeline_mode = #tpu.pipeline_mode<synchronous>, transform_indices = @transform_6, window_bounds = array<i64: 16, 8>}, {pipeline_mode = #tpu.pipeline_mode<synchronous>, transform_indices = @transform_7, window_bounds = array<i64: 16, 1>}, {transform_indices = @transform_8, window_bounds = array<i64: 1, 16, 128>}]} {
    %c0 = arith.constant 0 : index
    %c0_0 = arith.constant 0 : index
    %c0_1 = arith.constant 0 : index
    %0 = vector.load %arg1[%c0, %c0_0, %c0_1] : memref<1x16x128xf32, #tpu.memory_space<vmem>>, vector<1x16x128xf32>
    %1 = vector.shape_cast %0 : vector<1x16x128xf32> to vector<16x128xf32>
    %c0_2 = arith.constant 0 : index
    %c0_3 = arith.constant 0 : index
    %c0_4 = arith.constant 0 : index
    %2 = vector.load %arg2[%c0_2, %c0_3, %c0_4] : memref<1x1x128xf32, #tpu.memory_space<vmem>>, vector<1x1x128xf32>
    %3 = vector.shape_cast %2 : vector<1x1x128xf32> to vector<1x128xf32>
    %c0_5 = arith.constant 0 : index
    %c0_6 = arith.constant 0 : index
    %c0_7 = arith.constant 0 : index
    %4 = vector.load %arg3[%c0_5, %c0_6, %c0_7] : memref<1x1x128xf32, #tpu.memory_space<vmem>>, vector<1x1x128xf32>
    %5 = vector.shape_cast %4 : vector<1x1x128xf32> to vector<1x128xf32>
    %c0_8 = arith.constant 0 : index
    %c0_9 = arith.constant 0 : index
    %6 = vector.load %arg4[%c0_8, %c0_9] : memref<128x128xf32, #tpu.memory_space<vmem>>, vector<128x128xf32>
    %c0_10 = arith.constant 0 : index
    %c0_11 = arith.constant 0 : index
    %7 = vector.load %arg5[%c0_10, %c0_11] : memref<24x16xf32, #tpu.memory_space<vmem>>, vector<24x16xf32>
    %c0_12 = arith.constant 0 : index
    %c0_13 = arith.constant 0 : index
    %8 = vector.load %arg6[%c0_12, %c0_13] : memref<24x1xf32, #tpu.memory_space<vmem>>, vector<24x1xf32>
    %c0_14 = arith.constant 0 : index
    %c0_15 = arith.constant 0 : index
    %9 = vector.load %arg7[%c0_14, %c0_15] : memref<16x8xf32, #tpu.memory_space<vmem>>, vector<16x8xf32>
    %c0_16 = arith.constant 0 : index
    %c0_17 = arith.constant 0 : index
    %10 = vector.load %arg8[%c0_16, %c0_17] : memref<16x1xf32, #tpu.memory_space<vmem>>, vector<16x1xf32>
    %cst = arith.constant dense<0.000000e+00> : vector<24x128xf32>
    %11 = tpu.matmul %7, %1, %cst {dimension_numbers = #tpu.dot_dimension_numbers<[1], [0], [0], [1], [0, 0, 1, 1], [], []>} : vector<24x16xf32>, vector<16x128xf32>, vector<24x128xf32> -> vector<24x128xf32>
    %12 = vector.broadcast %8 : vector<24x1xf32> to vector<24x128xf32>
    %13 = arith.addf %11, %12 : vector<24x128xf32>
    %14 = vector.extract_strided_slice %13 {offsets = [0, 0], sizes = [8, 128], strides = [1, 1]} : vector<24x128xf32> to vector<8x128xf32>
    %15 = vector.extract_strided_slice %13 {offsets = [8, 0], sizes = [8, 128], strides = [1, 1]} : vector<24x128xf32> to vector<8x128xf32>
    %16 = vector.extract_strided_slice %13 {offsets = [16, 0], sizes = [8, 128], strides = [1, 1]} : vector<24x128xf32> to vector<8x128xf32>
    %cst_18 = arith.constant dense<0.000000e+00> : vector<128x128xf32>
    %17 = tpu.matmul %14, %15, %cst_18 {dimension_numbers = #tpu.dot_dimension_numbers<[0], [0], [1], [1], [0, 1, 1, 1], [], []>} : vector<8x128xf32>, vector<8x128xf32>, vector<128x128xf32> -> vector<128x128xf32>
    %18 = vector.broadcast %5 : vector<1x128xf32> to vector<128x128xf32>
    %19 = arith.addf %17, %18 : vector<128x128xf32>
    %20 = arith.addf %19, %6 : vector<128x128xf32>
    %cst_19 = arith.constant dense<0xFF800000> : vector<128xf32>
    %21 = vector.multi_reduction <maximumf>, %20, %cst_19 [1] : vector<128x128xf32> to vector<128xf32>
    %22 = vector.shape_cast %21 : vector<128xf32> to vector<128x1xf32>
    %23 = vector.broadcast %22 : vector<128x1xf32> to vector<128x128xf32>
    %24 = arith.subf %20, %23 : vector<128x128xf32>
    %25 = math.exp %24 : vector<128x128xf32>
    %26 = vector.broadcast %3 : vector<1x128xf32> to vector<8x128xf32>
    %27 = arith.mulf %16, %26 : vector<8x128xf32>
    %cst_20 = arith.constant 1.000000e+00 : f32
    %28 = vector.broadcast %cst_20 : f32 to vector<1x128xf32>
    %cst_21 = arith.constant dense<0.000000e+00> : vector<8x128xf32>
    %29 = tpu.matmul %27, %25, %cst_21 {dimension_numbers = #tpu.dot_dimension_numbers<[1], [1], [0], [0], [0, 0, 1, 0], [], []>} : vector<8x128xf32>, vector<128x128xf32>, vector<8x128xf32> -> vector<8x128xf32>
    %cst_22 = arith.constant dense<0.000000e+00> : vector<1x128xf32>
    %30 = tpu.matmul %28, %25, %cst_22 {dimension_numbers = #tpu.dot_dimension_numbers<[1], [1], [0], [0], [0, 0, 1, 0], [], []>} : vector<1x128xf32>, vector<128x128xf32>, vector<1x128xf32> -> vector<1x128xf32>
    %31 = tpu.reciprocal %30 : vector<1x128xf32> -> vector<1x128xf32>
    %32 = vector.broadcast %31 : vector<1x128xf32> to vector<8x128xf32>
    %33 = arith.mulf %29, %32 : vector<8x128xf32>
    %cst_23 = arith.constant 0.000000e+00 : f32
    %34 = vector.broadcast %cst_23 : f32 to vector<8x128xf32>
    %35 = arith.maximumf %33, %34 : vector<8x128xf32>
    %cst_24 = arith.constant dense<0.000000e+00> : vector<16x128xf32>
    %36 = tpu.matmul %9, %35, %cst_24 {dimension_numbers = #tpu.dot_dimension_numbers<[1], [0], [0], [1], [0, 0, 1, 1], [], []>} : vector<16x8xf32>, vector<8x128xf32>, vector<16x128xf32> -> vector<16x128xf32>
    %37 = vector.broadcast %10 : vector<16x1xf32> to vector<16x128xf32>
    %38 = arith.addf %36, %37 : vector<16x128xf32>
    %39 = vector.broadcast %3 : vector<1x128xf32> to vector<16x128xf32>
    %40 = arith.mulf %38, %39 : vector<16x128xf32>
    %c0_25 = arith.constant 0 : index
    %c0_26 = arith.constant 0 : index
    %c0_27 = arith.constant 0 : index
    %41 = vector.load %arg9[%c0_25, %c0_26, %c0_27] : memref<1x16x128xf32, #tpu.memory_space<vmem>>, vector<1x16x128xf32>
    %42 = vector.shape_cast %41 : vector<1x16x128xf32> to vector<16x128xf32>
    %43 = vector.shape_cast %40 : vector<16x128xf32> to vector<1x16x128xf32>
    tpu.vector_store %arg9[%c0_25, %c0_26, %c0_27], %43 {strides = array<i32>} : memref<1x16x128xf32, #tpu.memory_space<vmem>>, vector<1x16x128xf32>,
    return
  }
  func.func @transform_0(%arg0: i32) -> (i32, i32, i32) {
    %c0_i32 = arith.constant 0 : i32
    %c0_i32_0 = arith.constant 0 : i32
    %c0_i32_1 = arith.constant 0 : i32
    return %arg0, %c0_i32, %c0_i32_0 : i32, i32, i32
  }
  func.func @transform_1(%arg0: i32) -> (i32, i32, i32) {
    %c0_i32 = arith.constant 0 : i32
    %c0_i32_0 = arith.constant 0 : i32
    %c0_i32_1 = arith.constant 0 : i32
    return %arg0, %c0_i32, %c0_i32_0 : i32, i32, i32
  }
  func.func @transform_2(%arg0: i32) -> (i32, i32, i32) {
    %c0_i32 = arith.constant 0 : i32
    %c0_i32_0 = arith.constant 0 : i32
    %c0_i32_1 = arith.constant 0 : i32
    return %arg0, %c0_i32, %c0_i32_0 : i32, i32, i32
  }
  func.func @transform_3(%arg0: i32) -> (i32, i32) {
    %c0_i32 = arith.constant 0 : i32
    %c0_i32_0 = arith.constant 0 : i32
    %c0_i32_1 = arith.constant 0 : i32
    return %c0_i32, %c0_i32_0 : i32, i32
  }
  func.func @transform_4(%arg0: i32) -> (i32, i32) {
    %c0_i32 = arith.constant 0 : i32
    %c0_i32_0 = arith.constant 0 : i32
    %c0_i32_1 = arith.constant 0 : i32
    return %c0_i32, %c0_i32_0 : i32, i32
  }
  func.func @transform_5(%arg0: i32) -> (i32, i32) {
    %c0_i32 = arith.constant 0 : i32
    %c0_i32_0 = arith.constant 0 : i32
    %c0_i32_1 = arith.constant 0 : i32
    return %c0_i32, %c0_i32_0 : i32, i32
  }
  func.func @transform_6(%arg0: i32) -> (i32, i32) {
    %c0_i32 = arith.constant 0 : i32
    %c0_i32_0 = arith.constant 0 : i32
    %c0_i32_1 = arith.constant 0 : i32
    return %c0_i32, %c0_i32_0 : i32, i32
  }
  func.func @transform_7(%arg0: i32) -> (i32, i32) {
    %c0_i32 = arith.constant 0 : i32
    %c0_i32_0 = arith.constant 0 : i32
    %c0_i32_1 = arith.constant 0 : i32
    return %c0_i32, %c0_i32_0 : i32, i32
  }
  func.func @transform_8(%arg0: i32) -> (i32, i32, i32) {
    %c0_i32 = arith.constant 0 : i32
    %c0_i32_0 = arith.constant 0 : i32
    %c0_i32_1 = arith.constant 0 : i32
    return %arg0, %c0_i32, %c0_i32_0 : i32, i32, i32
  }
}

</mosaic_0001>

<bundles_post_ra>
// kernel: tpu_custom_call.1
= control target key start
LH: loop header
LB: loop body
LE: loop exit
PB: predicated region body
PF: predicated region fallthrough
CT: control target
= control target key end

     0   :  { %13 = vsyncpa [#allocation3], 0  ;;  %s1430_s0 = inlined_call_operand.vmem [shape: f32[4,16,128], index: 0, kind: input, shape index: {}]   ;;  %s1431_s1 = inlined_call_operand.vmem [shape: f32[4,1,128], index: 1, kind: input, shape index: {}]   ;;  %s1432_s2 = inlined_call_operand.vmem [shape: f32[4,1,128], index: 2, kind: input, shape index: {}]   ;;  %s1433_s3 = inlined_call_operand.hbm [shape: f32[128,128], index: 3, kind: input, shape index: {}]   ;;  %s1434_s4 = inlined_call_operand.vmem [shape: f32[24,16], index: 4, kind: input, shape index: {}]   ;;  %s1435_s5 = inlined_call_operand.vmem [shape: f32[24,1], index: 5, kind: input, shape index: {}]   ;;  %s1436_s6 = inlined_call_operand.vmem [shape: f32[16,8], index: 6, kind: input, shape index: {}]   ;;  %s1437_s7 = inlined_call_operand.vmem [shape: f32[16,1], index: 7, kind: input, shape index: {}]   ;;  %s1438_s8 = inlined_call_operand.hbm [shape: f32[4,16,128], index: 8, kind: output, shape index: {}]  }
   0x1   :  { %14 = vsyncpa [#allocation4], 0 }
   0x2   :  { %16 = vsyncpa [#allocation4 + $0x1], 0  ;;  %s1172_s27 = smov 0   ;;  %s1174_s28 = smov 0  }
   0x3   :  { %s1176_s29 = smov 0   ;;  %s1178_s30 = smov 0  }
   0x4 LB: > { %s1193_s9 = sadd.s32 4294967295, %s1118_s30   ;;  %s887_s10 = sadd.s32 4294967294, %s1118_s30   ;;  %s1118_s30 = sphi %s1178_s30, %s1444_s30   ;;  %s1114_s29 = sphi %s1176_s29, %s1443_s29   ;;  %s1110_s28 = sphi %s1174_s28, %s1442_s28   ;;  %s1106_s27 = sphi %s1172_s27, %s1441_s27  }
   0x5   : > { %s1197_s11 = sadd.s32 1, %s1118_s30   ;;  %s212_s12 = sadd.s32 1, %s1114_s29 }
   0x6   : > { %s209_s13 = ssub.s32 %s1118_s30, %s1197_s11  ;;  %p222_p0 = scmp.ne.s32.totalorder %s1114_s29, %s1110_s28 }
   0x7   : > { %p210_p1 = scmp.eq.s32.totalorder %s209_s13, 0  ;;  %p223_p2 = scmp.eq.s32.totalorder %s1193_s9, 3 }
   0x8   : > { %p228_p3 = scmp.ne.s32.totalorder %s1110_s28, %s1106_s27  ;;  %p229_p4 = scmp.eq.s32.totalorder %s887_s10, 3 }
   0x9   : > { %s1208_s14 = scalar_select %p210_p1, %s1114_s29, %s212_s12  }
   0xa   : > { %p1210_p5 = por %p223_p2, %p222_p0  ;;  %p1214_p6 = por %p229_p4, %p228_p3 }
   0xb   : > { %p888_p7 = scmp.ge.s32.totalorder %s1118_s30, 1  ;;  %p236_p8 = scmp.lt.s32.totalorder %s1118_s30, 5 }
   0xc   : > { %p940_p9 = scmp.eq.s32.totalorder %s1193_s9, 0  ;;  %s247_s19 = sshll.u32 %s1433_s3, 4  ;;  %s248_s19 = int_to_ptr.hbm [resolvable:$true] %s247_s19 }
   0xd   : > { %p237_p10 = pnand %p888_p7, %p236_p8  ;;  %s1120_s20 = smov [#allocation2]  }
   0xe   : > { %s249_s21 = sshll.u32 %s1120_s20, 4  ;;  %s1121_s22 = smov 128   ;;  %s250_s21 = int_to_ptr.vmem [resolvable:$true] %s249_s21 }
   0xf   : > { %p932_p11 = pneg %p237_p10  ;;  %s1122_s23 = smov 8  }
  0x10   : > { %297 = sbr.rel (%p237_p10) target bundleno = 1077 (0x435), region = 52 }
  0x11   : > { %p933_p12 = pnand %p940_p9, %p932_p11 }
  0x13   : > { %935 = dma.hbm_to_vmem [thread:$0]  (!%p933_p12), %s248_s19, 2048, %s250_s21, [#allocation3], %s1121_s22, %s1121_s22, %s1122_s23  }
  0x15   : > { %1097 = dma.done.wait (%p940_p9), [#allocation3], 2048  }
  0x16   : > { %1099 = vsyncadd (%p940_p9), [#allocation3], 4294965248  ;;  %p338_p13 = scmp.lt.s32.totalorder %s1193_s9, 3  ;;  %v1123_v0 = vmov 0   ;;  %v369_v3 = vld [vmem:[%s1434_s4] sm:$0xff]  ;;  %vm394_vm0 = vcmask 130048  }
  0x17   : > { %983 = vset.pattern.permute.xlu0 %v1123_v0  ;;  %984 = vset.pattern.permute.xlu1 %v1123_v0  ;;  %v372_v4 = vld [vmem:[%s1435_s5] sm:$0xff]  ;;  %v370_v5 = vld [vmem:[%s1434_s4 + $0x8] sm:$0xff]  ;;  %v371_v7 = vld [vmem:[%s1434_s4 + $0x10] sm:$0xff]  ;;  %vm465_vm1 = vcmask 64512   ;;  %s335_s21 = sand.u32 1, %s1110_s28  }
  0x18   : > { %s1232_s24 = scalar_select %p338_p13, %s1193_s9, 3  ;;  %985 = vset.pattern.permute.xlu2 %v1123_v0  ;;  %381 = vperm.xlu0 %983, %v372_v4   ;;  %v373_v6 = vld [vmem:[%s1435_s5 + $0x8] sm:$0xff]  ;;  %v361_v39 = vld [vmem:[#allocation2 + $0x40] sm:$0xff]  ;;  %v367_v47 = vld [vmem:[#allocation2 + $0x70] sm:$0xff] }
  0x19   : > { %386 = vperm.xlu1 %984, %v373_v6   ;;  %v366_v52 = vld [vmem:[#allocation2 + $0x68] sm:$0xff]  ;;  %v368_v53 = vld [vmem:[#allocation2 + $0x78] sm:$0xff]  ;;  %v365_v59 = vld [vmem:[#allocation2 + $0x60] sm:$0xff]  ;;  %s893_s22 = sshll.u32 %s335_s21, 4 }
  0x1a   : > { %s922_s25 = sshll.u32 %s1232_s24, 4  ;;  %s348_s18 = scalar_lea.vmem %s1432_s2, %s1232_s24  ;;  %v359_v60 = vld [vmem:[#allocation2 + $0x30] sm:$0xff] }
  0x1b   : > { %s342_s12 = scalar_lea.vmem %s1430_s0, %s922_s25  ;;  %v1284_v37 = vld [vmem:[%s348_s18] ss:$0 sm:$0xff]  ;;  %s345_s23 = scalar_lea.vmem %s1431_s1, %s1232_s24 }
  0x1c   : > { %v350_v1 = vld [vmem:[%s342_s12 + $0x8] sm:$0xff]  ;;  %v349_v2 = vld [vmem:[%s342_s12] sm:$0xff]  ;;  %s337_s25 = scalar_lea.vmem [#allocation5], %s893_s22  ;;  %s780_s24 = scalar_lea.sflag [#allocation4], %s335_s21 }
  0x1d   : > { %418 = vmatpush.msra.mxu0 %v350_v1  ;;  %v364_v1 = vld [vmem:[#allocation2 + $0x58] sm:$0xff]  ;;  %s792_s13 = sshll.u32 %s337_s25, 4  ;;  %s1072_s22 = scalar_lea.hbm %s1438_s8, 64  ;;  %s793_s13 = int_to_ptr.vmem [resolvable:$true] %s792_s13 }
  0x1f   : > { %419 = vmatpush.msra.mxu0 %v349_v2  ;;  %v357_v2 = vld [vmem:[#allocation2 + $0x20] sm:$0xff] }
  0x20   : > { %896 = vmatmul.msk.f32.vlgmr.msra.gmra.mxu0 %vm394_vm0, %v369_v3 }
  0x28   : > { %897 = vmatmul.msk.f32.gmra.mxu0 %vm394_vm0, %v370_v5 }
  0x30   : > { %898 = vmatmul.msk.f32.gmra.mxu0 %vm394_vm0, %v371_v7 }
  0x8a   : > { %v382_v8 = vpop.permute.xlu0 %381 }
  0x8b   : > { %v387_v11 = vpop.permute.xlu1 %386 }
  0x9d   : > { %v421_v9 = vpop.f32.mrf.mxu0 }
  0x9e   : > { %v422_v10 = vadd.f32 %v421_v9, %v382_v8  ;;  %v363_v8 = vld [vmem:[#allocation2 + $0x50] sm:$0xff] }
  0x9f   : > { %v355_v9 = vld [vmem:[#allocation2 + $0x10] sm:$0xff] }
  0xa0   : > { %433 = vxpose.xlu0.b32.start.end [1/1] (short) %v422_v10, 128 }
  0xa5   : > { %v424_v12 = vpop.f32.mrf.mxu0 }
  0xa6   : > { %v425_v13 = vadd.f32 %v424_v12, %v387_v11 }
  0xa8   : > { %529 = vmatpush.msrb.mxu0 %v425_v13  ;;  %924 = vmatpush.msra.mxu1 %v425_v13 }
  0xa9   : > { %925 = vmatpush.msra.mxu2 %v425_v13 }
  0xad   : > { %v1312_v3 = vpop.f32.mrf.mxu0 }
 0x144   : > { %v449_v14 = vpop.trf.xlu0 }
 0x145   : > { %899 = vmatmul.msk.f32.vlgmr.msrb.gmra.mxu0 %vm465_vm1, %v449_v14 }
 0x14c   : > { %v450_v15 = vpop.trf.xlu0 }
 0x14d   : > { %900 = vmatmul.msk.f32.vlgmr.msra.gmra.mxu1 %vm465_vm1, %v450_v15 }
 0x154   : > { %v451_v16 = vpop.trf.xlu0 }
 0x155   : > { %901 = vmatmul.msk.f32.gmra.mxu1 %vm465_vm1, %v451_v16  ;;  %v362_v16 = vld [vmem:[#allocation2 + $0x48] sm:$0xff] }
 0x15c   : > { %v452_v17 = vpop.trf.xlu0 }
 0x15d   : > { %902 = vmatmul.msk.f32.gmra.mxu1 %vm465_vm1, %v452_v17  ;;  %v353_v17 = vld [vmem:[#allocation2] sm:$0xff] }
 0x164   : > { %v453_v18 = vpop.trf.xlu0 }
 0x165   : > { %903 = vmatmul.msk.f32.gmra.mxu1 %vm465_vm1, %v453_v18 }
 0x16c   : > { %v454_v19 = vpop.trf.xlu0 }
 0x16d   : > { %904 = vmatmul.msk.f32.gmra.mxu1 %vm465_vm1, %v454_v19 }
 0x174   : > { %v455_v20 = vpop.trf.xlu0 }
 0x175   : > { %905 = vmatmul.msk.f32.gmra.mxu1 %vm465_vm1, %v455_v20 }
 0x17c   : > { %v456_v21 = vpop.trf.xlu0 }
 0x17d   : > { %906 = vmatmul.msk.f32.gmra.mxu1 %vm465_vm1, %v456_v21  ;;  %v360_v21 = vld [vmem:[#allocation2 + $0x38] sm:$0xff] }
 0x184   : > { %v457_v22 = vpop.trf.xlu0 }
 0x185   : > { %907 = vmatmul.msk.f32.gmra.mxu1 %vm465_vm1, %v457_v22 }
 0x18c   : > { %v458_v23 = vpop.trf.xlu0 }
 0x18d   : > { %908 = vmatmul.msk.f32.gmra.mxu1 %vm465_vm1, %v458_v23 }
 0x194   : > { %v459_v24 = vpop.trf.xlu0 }
 0x195   : > { %909 = vmatmul.msk.f32.vlgmr.msra.gmra.mxu2 %vm465_vm1, %v459_v24  ;;  %v358_v24 = vld [vmem:[#allocation2 + $0x28] sm:$0xff] }
 0x19c   : > { %v460_v25 = vpop.trf.xlu0 }
 0x19d   : > { %910 = vmatmul.msk.f32.gmra.mxu2 %vm465_vm1, %v460_v25 }
 0x1a4   : > { %v461_v26 = vpop.trf.xlu0 }
 0x1a5   : > { %911 = vmatmul.msk.f32.gmra.mxu2 %vm465_vm1, %v461_v26 }
 0x1ac   : > { %v462_v27 = vpop.trf.xlu0 }
 0x1ad   : > { %912 = vmatmul.msk.f32.gmra.mxu2 %vm465_vm1, %v462_v27  ;;  %v356_v27 = vld [vmem:[#allocation2 + $0x18] sm:$0xff] }
 0x1b4   : > { %v463_v28 = vpop.trf.xlu0 }
 0x1b5   : > { %913 = vmatmul.msk.f32.gmra.mxu2 %vm465_vm1, %v463_v28 }
 0x1bc   : > { %v464_v29 = vpop.trf.xlu0 }
 0x1bd   : > { %914 = vmatmul.msk.f32.gmra.mxu2 %vm465_vm1, %v464_v29  ;;  %v377_v29 = vld [vmem:[%s1437_s7] sm:$0xff] }
 0x1c2   : > { %v531_v12 = vpop.f32.mrf.mxu0 }
 0x1c3   : > { %v532_v14 = vadd.f32 %v1284_v37, %v531_v12 }
 0x1c5   : > { %v1332_v19 = vadd.f32 %v532_v14, %v353_v17 }
 0x1ca   : > { %v1273_v30 = vpop.f32.mrf.mxu1 }
 0x1d2   : > { %v537_v31 = vpop.f32.mrf.mxu1 }
 0x1d3   : > { %v538_v6 = vadd.f32 %v1284_v37, %v537_v31  ;;  %v535_v31 = vadd.f32 %v1284_v37, %v1273_v30 }
 0x1d5   : > { %v1324_v11 = vadd.f32 %v538_v6, %v355_v9 }
 0x1da   : > { %v1275_v32 = vpop.f32.mrf.mxu1 }
 0x1db   : > { %v541_v26 = vadd.f32 %v1284_v37, %v1275_v32  ;;  %v374_v32 = vld [vmem:[%s1435_s5 + $0x10] sm:$0xff] }
 0x1dd   : > { %v1347_v28 = vadd.f32 %v541_v26, %v356_v27 }
 0x1e2   : > { %v543_v33 = vpop.f32.mrf.mxu1 }
 0x1e3   : > { %v544_v63 = vadd.f32 %v1284_v37, %v543_v33  ;;  %v354_v33 = vld [vmem:[#allocation2 + $0x8] sm:$0xff] }
 0x1e5   : > { %v1316_v5 = vadd.f32 %v544_v63, %v357_v2 }
 0x1ea   : > { %v1277_v34 = vpop.f32.mrf.mxu1 }
 0x1eb   : > { %v547_v23 = vadd.f32 %v1284_v37, %v1277_v34  ;;  %v1359_v34 = vadd.f32 %v535_v31, %v354_v33 }
 0x1ed   : > { %v1342_v25 = vadd.f32 %v547_v23, %v358_v24 }
 0x1f2   : > { %v549_v35 = vpop.f32.mrf.mxu1 }
 0x1f3   : > { %v550_v57 = vadd.f32 %v1284_v37, %v549_v35  ;;  %v378_v35 = vld [vmem:[%s1437_s7 + $0x8] sm:$0xff] }
 0x1f5   : > { %v1306_v62 = vadd.f32 %v550_v57, %v359_v60 }
 0x1fa   : > { %v552_v36 = vpop.f32.mrf.mxu1 }
 0x1fb   : > { %v553_v20 = vadd.f32 %v1284_v37, %v552_v36 }
 0x1fd   : > { %v1337_v22 = vadd.f32 %v553_v20, %v360_v21 }
 0x202   : > { %v555_v38 = vpop.f32.mrf.mxu1 }
 0x203   : > { %v556_v40 = vadd.f32 %v1284_v37, %v555_v38 }
 0x205   : > { %v1287_v41 = vadd.f32 %v556_v40, %v361_v39 }
 0x207   : > { %611 = vmax.xlane.f32.xlu0 %v1287_v41 }
 0x20a   : > { %v558_v13 = vpop.f32.mrf.mxu1 }
 0x20b   : > { %v559_v15 = vadd.f32 %v1284_v37, %v558_v13 }
 0x20d   : > { %v1330_v18 = vadd.f32 %v559_v15, %v362_v16 }
 0x218   : > { %v561_v42 = vpop.f32.mrf.mxu2 }
 0x219   : > { %v562_v7 = vadd.f32 %v1284_v37, %v561_v42 }
 0x21b   : > { %v1322_v10 = vadd.f32 %v562_v7, %v363_v8 }
 0x220   : > { %v564_v43 = vpop.f32.mrf.mxu2 }
 0x221   : > { %v565_v0 = vadd.f32 %v1284_v37, %v564_v43 }
 0x223   : > { %v1314_v4 = vadd.f32 %v565_v0, %v364_v1 }
 0x228   : > { %v567_v44 = vpop.f32.mrf.mxu2 }
 0x229   : > { %v568_v58 = vadd.f32 %v1284_v37, %v567_v44 }
 0x22b   : > { %v1304_v61 = vadd.f32 %v568_v58, %v365_v59 }
 0x230   : > { %v570_v45 = vpop.f32.mrf.mxu2 }
 0x231   : > { %v571_v50 = vadd.f32 %v1284_v37, %v570_v45 }
 0x233   : > { %v1296_v55 = vadd.f32 %v571_v50, %v366_v52 }
 0x238   : > { %v573_v46 = vpop.f32.mrf.mxu2 }
 0x239   : > { %v574_v48 = vadd.f32 %v1284_v37, %v573_v46 }
 0x23b   : > { %v1291_v49 = vadd.f32 %v574_v48, %v367_v47 }
 0x23d   : > { %623 = vmax.xlane.f32.xlu2 %v1291_v49 }
 0x240   : > { %v576_v51 = vpop.f32.mrf.mxu2 }
 0x241   : > { %v577_v54 = vadd.f32 %v1284_v37, %v576_v51 }
 0x243   : > { %v1298_v56 = vadd.f32 %v577_v54, %v368_v53 }
 0x245   : > { %621 = vmax.xlane.f32.xlu2 %v1296_v55  ;;  %625 = vmax.xlane.f32.xlu1 %v1298_v56 }
 0x24d   : > { %619 = vmax.xlane.f32.xlu2 %v1304_v61  ;;  %607 = vmax.xlane.f32.xlu1 %v1306_v62 }
 0x255   : > { %617 = vmax.xlane.f32.xlu2 %v1314_v4  ;;  %603 = vmax.xlane.f32.xlu1 %v1316_v5 }
 0x25d   : > { %615 = vmax.xlane.f32.xlu2 %v1322_v10  ;;  %599 = vmax.xlane.f32.xlu1 %v1324_v11 }
 0x265   : > { %613 = vmax.xlane.f32.xlu2 %v1330_v18  ;;  %595 = vmax.xlane.f32.xlu1 %v1332_v19 }
 0x26d   : > { %609 = vmax.xlane.f32.xlu2 %v1337_v22 }
 0x275   : > { %605 = vmax.xlane.f32.xlu2 %v1342_v25 }
 0x27a   : > { %v612_v59 = vpop.xlane.xlu0 %611 }
 0x27b   : > { %v635_v63 = vsub.f32 %v1287_v41, %v612_v59 }
 0x27d   : > { %601 = vmax.xlane.f32.xlu2 %v1347_v28 }
 0x27e   : > { %738 = vperm.xlu1 %984, %v377_v29  }
 0x285   : > { %597 = vmax.xlane.f32.xlu2 %v1359_v34 }
 0x29d   : > { %391 = vperm.xlu2 %985, %v374_v32  }
 0x2a5   : > { %743 = vperm.xlu2 %985, %v378_v35  }
 0x2b0   : > { %v624_v36 = vpop.xlane.xlu2 %623 }
 0x2b1   : > { %v641_v37 = vsub.f32 %v1291_v49, %v624_v36 }
 0x2b3   : > { %v671_v42 = vmul.f32 1.442695, %v641_v37 }
 0x2b8   : > { %v622_v38 = vpop.xlane.xlu2 %621  ;;  %v626_v39 = vpop.xlane.xlu1 %625 }
 0x2b9   : > { %v642_v30 = vsub.f32 %v1298_v56, %v626_v39  ;;  %v640_v43 = vsub.f32 %v1296_v55, %v622_v38 }
 0x2bb   : > { %v673_v40 = vmul.f32 1.442695, %v642_v30  ;;  %v669_v45 = vmul.f32 1.442695, %v640_v43 }
 0x2bd   : > { %988 = vpow2.f32 %v673_v40  ;;  %v1124_v40 = vmov 1.0  }
 0x2be   : > { %990 = vpow2.f32 %v671_v42 }
 0x2bf   : > { %992 = vpow2.f32 %v669_v45 }
 0x2c0   : > { %v620_v44 = vpop.xlane.xlu2 %619  ;;  %v608_v60 = vpop.xlane.xlu1 %607 }
 0x2c1   : > { %v639_v46 = vsub.f32 %v1304_v61, %v620_v44  ;;  %v633_v7 = vsub.f32 %v1306_v62, %v608_v60 }
 0x2c3   : > { %v989_v47 = vpop.eup %988  ;;  %v667_v48 = vmul.f32 1.442695, %v639_v46  ;;  %v655_v41 = vmul.f32 1.442695, %v633_v7 }
 0x2c4   : > { %679 = vmatpush.xpose.msrb.mxu2 %v989_v47  ;;  %699 = vmatpush.xpose.msra.mxu3 %v989_v47  ;;  %v991_v50 = vpop.eup %990 }
 0x2c5   : > { %994 = vpow2.f32 %v667_v48  ;;  %v993_v53 = vpop.eup %992 }
 0x2c8   : > { %v618_v51 = vpop.xlane.xlu2 %617  ;;  %680 = vmatpush.xpose.msrb.mxu2 %v991_v50  ;;  %700 = vmatpush.xpose.msra.mxu3 %v991_v50  ;;  %v604_v9 = vpop.xlane.xlu1 %603 }
 0x2c9   : > { %v638_v52 = vsub.f32 %v1314_v4, %v618_v51  ;;  %v659_v4 = vmul.f32 1.442695, %v635_v63  ;;  %v631_v15 = vsub.f32 %v1316_v5, %v604_v9 }
 0x2cb   : > { %v665_v49 = vmul.f32 1.442695, %v638_v52  ;;  %v995_v54 = vpop.eup %994  ;;  %v651_v20 = vmul.f32 1.442695, %v631_v15 }
 0x2cc   : > { %681 = vmatpush.xpose.msrb.mxu2 %v993_v53  ;;  %701 = vmatpush.xpose.msra.mxu3 %v993_v53 }
 0x2cd   : > { %996 = vpow2.f32 %v665_v49 }
 0x2d0   : > { %v616_v55 = vpop.xlane.xlu2 %615  ;;  %682 = vmatpush.xpose.msrb.mxu2 %v995_v54  ;;  %702 = vmatpush.xpose.msra.mxu3 %v995_v54 }
 0x2d1   : > { %v637_v56 = vsub.f32 %v1322_v10, %v616_v55 }
 0x2d3   : > { %v997_v57 = vpop.eup %996  ;;  %v663_v58 = vmul.f32 1.442695, %v637_v56  ;;  %v375_v56 = vld [vmem:[%s1436_s6] sm:$0xff] }
 0x2d4   : > { %683 = vmatpush.xpose.msrb.mxu2 %v997_v57  ;;  %703 = vmatpush.xpose.msra.mxu3 %v997_v57  ;;  %v376_v57 = vld [vmem:[%s1436_s6 + $0x8] sm:$0xff] }
 0x2d5   : > { %998 = vpow2.f32 %v663_v58 }
 0x2d8   : > { %v614_v61 = vpop.xlane.xlu2 %613 }
 0x2d9   : > { %v636_v0 = vsub.f32 %v1330_v18, %v614_v61  ;;  %v600_v18 = vpop.xlane.xlu1 %599 }
 0x2da   : > { %v629_v23 = vsub.f32 %v1324_v11, %v600_v18 }
 0x2db   : > { %v999_v1 = vpop.eup %998  ;;  %v661_v2 = vmul.f32 1.442695, %v636_v0 }
 0x2dc   : > { %684 = vmatpush.xpose.msrb.mxu2 %v999_v1  ;;  %704 = vmatpush.xpose.msra.mxu3 %v999_v1 }
 0x2dd   : > { %1000 = vpow2.f32 %v661_v2 }
 0x2de   : > { %1002 = vpow2.f32 %v659_v4 }
 0x2e0   : > { %v610_v6 = vpop.xlane.xlu2 %609 }
 0x2e1   : > { %v634_v8 = vsub.f32 %v1337_v22, %v610_v6  ;;  %v596_v27 = vpop.xlane.xlu1 %595 }
 0x2e2   : > { %v627_v33 = vsub.f32 %v1332_v19, %v596_v27  ;;  %v987_v19 = vld [vmem:[%s345_s23] ss:$0 sm:$0xff]  ;;  %s923_s23 = sshll.u32 %s1193_s9, 4 }
 0x2e3   : > { %v1001_v10 = vpop.eup %1000  ;;  %v657_v12 = vmul.f32 1.442695, %v634_v8  ;;  %s791_s12 = scalar_lea.hbm %s1438_s8, %s923_s23 }
 0x2e4   : > { %685 = vmatpush.xpose.msrb.mxu2 %v1001_v10  ;;  %705 = vmatpush.xpose.msra.mxu3 %v1001_v10  ;;  %v1003_v13 = vpop.eup %1002  ;;  %s794_s17 = sshll.u32 %s791_s12, 4  ;;  %s795_s17 = int_to_ptr.hbm [resolvable:$true] %s794_s17 }
 0x2e5   : > { %1004 = vpow2.f32 %v657_v12  ;;  %s1066_s19 = sshra.s32 %s795_s17, 4  ;;  %s1067_s19 = int_to_ptr.hbm [resolvable:$true] %s1066_s19 }
 0x2e6   : > { %1006 = vpow2.f32 %v655_v41  ;;  %s1068_s9 = scalar_lea.hbm %s1067_s19, 16  ;;  %p1073_p3 = scmp.lt.s32.totalorder %s1067_s19, %s1438_s8 }
 0x2e7   : > { %p1069_p0 = scmp.ne.s32.totalorder %s1067_s19, %s1068_s9  ;;  %p1074_p4 = scmp.lt.s32.totalorder %s1072_s22, %s1068_s9 }
 0x2e8   : > { %v606_v14 = vpop.xlane.xlu2 %605  ;;  %686 = vmatpush.xpose.msrb.mxu2 %v1003_v13  ;;  %706 = vmatpush.xpose.msra.mxu3 %v1003_v13 }
 0x2e9   : > { %v632_v16 = vsub.f32 %v1342_v25, %v606_v14  ;;  %v647_v25 = vmul.f32 1.442695, %v629_v23  ;;  %p1070_p1 = pnand %p1069_p0, %p1210_p5  ;;  %p1075_p7 = por %p1074_p4, %p1073_p3 }
 0x2eb   : > { %v1005_v17 = vpop.eup %1004  ;;  %v653_v62 = vmul.f32 1.442695, %v632_v16  ;;  %p1071_p2 = pneg %p1070_p1 }
 0x2ec   : > { %687 = vmatpush.xpose.msrb.mxu2 %v1005_v17  ;;  %707 = vmatpush.xpose.msra.mxu3 %v1005_v17  ;;  %v1007_v21 = vpop.eup %1006 }
 0x2ed   : > { %1008 = vpow2.f32 %v653_v62  ;;  %p1076_p8 = pnand %p1075_p7, %p1071_p2 }
 0x2ee   : > { %1010 = vpow2.f32 %v651_v20 }
 0x2f0   : > { %v602_v22 = vpop.xlane.xlu2 %601  ;;  %688 = vmatpush.xpose.msrb.mxu2 %v1007_v21  ;;  %708 = vmatpush.xpose.msra.mxu3 %v1007_v21  ;;  %v739_v58 = vpop.permute.xlu1 %738 }
 0x2f1   : > { %v630_v24 = vsub.f32 %v1347_v28, %v602_v22  ;;  %v643_v28 = vmul.f32 1.442695, %v627_v33 }
 0x2f3   : > { %v1009_v26 = vpop.eup %1008  ;;  %v649_v5 = vmul.f32 1.442695, %v630_v24 }
 0x2f4   : > { %689 = vmatpush.xpose.msrb.mxu2 %v1009_v26  ;;  %709 = vmatpush.xpose.msra.mxu3 %v1009_v26  ;;  %v1011_v29 = vpop.eup %1010 }
 0x2f5   : > { %1012 = vpow2.f32 %v649_v5 }
 0x2f6   : > { %1014 = vpow2.f32 %v647_v25 }
 0x2f8   : > { %v598_v31 = vpop.xlane.xlu2 %597  ;;  %690 = vmatpush.xpose.msrb.mxu2 %v1011_v29  ;;  %710 = vmatpush.xpose.msra.mxu3 %v1011_v29 }
 0x2f9   : > { %v628_v32 = vsub.f32 %v1359_v34, %v598_v31 }
 0x2fb   : > { %v1013_v11 = vpop.eup %1012  ;;  %v645_v35 = vmul.f32 1.442695, %v628_v32 }
 0x2fc   : > { %691 = vmatpush.xpose.msrb.mxu2 %v1013_v11  ;;  %711 = vmatpush.xpose.msra.mxu3 %v1013_v11  ;;  %v1015_v36 = vpop.eup %1014 }
 0x2fd   : > { %1016 = vpow2.f32 %v645_v35 }
 0x2fe   : > { %1018 = vpow2.f32 %v643_v28 }
 0x300   : > { %692 = vmatpush.xpose.msrb.mxu2 %v1015_v36  ;;  %712 = vmatpush.xpose.msra.mxu3 %v1015_v36  ;;  %v392_v38 = vpop.permute.xlu2 %391 }
 0x301   : > { %v428_v34 = vadd.f32 %v1312_v3, %v392_v38 }
 0x303   : > { %v1017_v39 = vpop.eup %1016  ;;  %v678_v37 = vmul.f32 %v987_v19, %v428_v34 }
 0x304   : > { %693 = vmatpush.xpose.msrb.mxu2 %v1017_v39  ;;  %713 = vmatpush.xpose.msra.mxu3 %v1017_v39  ;;  %v1019_v30 = vpop.eup %1018 }
 0x308   : > { %694 = vmatpush.xpose.msrb.mxu2 %v1019_v30  ;;  %714 = vmatpush.xpose.msra.mxu3 %v1019_v30  ;;  %v744_v63 = vpop.permute.xlu2 %743 }
 0x30b   : > { %695 = vmatmul.f32.vlgmr.msrb.gmra.mxu2 %v678_v37  ;;  %715 = vmatmul.f32.vlgmr.msra.gmra.mxu3 %v1124_v40 }
 0x38e   : > { %v716_v42 = vpop.f32.mrf.mxu3  ;;  %v696_v53 = vpop.f32.mrf.mxu2 }
 0x38f   : > { %1020 = vrcp.f32 %v716_v42  ;;  %v730_v46 = vand.u32 2147483648, %v716_v42  ;;  %v728_v48 = vand.u32 2147483647, %v716_v42  ;;  %vm724_vm3 = vweird.f32 %v716_v42 }
 0x391   : > { %v731_v3 = vor.u32 1.1754944e-38, %v730_v46  ;;  %vm729_vm5 = vcmp.eq.f32.partialorder %v728_v48, 8.507059e+37 }
 0x395   : > { %v1021_v43 = vpop.eup %1020 }
 0x396   : > { %v720_v44 = vmul.f32 %v1021_v43, %v716_v42  ;;  %vm725_vm2 = vweird.f32 %v1021_v43 }
 0x397   : > { %vm726_vm4 = vmor %vm724_vm3, %vm725_vm2 }
 0x398   : > { %v721_v45 = vsub.f32 1.0, %v720_v44 }
 0x39a   : > { %v722_v47 = vmul.f32 %v1021_v43, %v721_v45 }
 0x39c   : > { %v723_v50 = vadd.f32 %v1021_v43, %v722_v47 }
 0x39e   : > { %v727_v51 = vsel %vm726_vm4, %v1021_v43, %v723_v50 }
 0x39f   : > { %v732_v52 = vsel %vm729_vm5, %v731_v3, %v727_v51 }
 0x3a0   : > { %v733_v49 = vperm.slane %v732_v52, 0 }
 0x3a2   : > { %v734_v54 = vmul.f32 %v733_v49, %v696_v53 }
 0x3a4   : > { %v735_v55 = vmax.f32 %v734_v54, 0.0 }
 0x3a6   : > { %767 = vmatpush.msra.mxu0 %v735_v55 }
 0x3a7   : > { %915 = vmatmul.msk.f32.vlgmr.msra.gmra.mxu0 %vm465_vm1, %v375_v56 }
 0x3af   : > { %916 = vmatmul.msk.f32.gmra.mxu0 %vm465_vm1, %v376_v57 }
 0x424   : > { %v769_v59 = vpop.f32.mrf.mxu0 }
 0x425   : > { %v770_v60 = vadd.f32 %v769_v59, %v739_v58 }
 0x427   : > { %v775_v61 = vmul.f32 %v987_v19, %v770_v60 }
 0x429   : > { %777 = vst [vmem:[%s337_s25] sm:$0xff] %v775_v61 }
 0x42c   : > { %v772_v0 = vpop.f32.mrf.mxu0 }
 0x42d   : > { %v773_v1 = vadd.f32 %v772_v0, %v744_v63 }
 0x42f   : > { %v776_v2 = vmul.f32 %v987_v19, %v773_v1 }
 0x431   : > { %778 = vst [vmem:[%s337_s25 + $0x8] sm:$0xff] %v776_v2 }
 0x432   : > { %1079 = shalt.err (!%p1076_p8)
}
 0x433   : > { %s1125_s21 = smov 128   ;;  %s1126_s25 = smov 8  }
 0x434   : > { %930 = dma.vmem_to_hbm [thread:$0]  (%p1210_p5), %s793_s13, 256, %s795_s17, %s780_s24, %s1125_s21, %s1125_s21, %s1126_s25  }
 0x435 PF: > { %p942_p9 = scmp.ge.s32.totalorder %s1118_s30, 2  ;;  %s809_s10 = sand.u32 1, %s1106_s27  }
 0x436   : > { %s810_s12 = scalar_lea.sflag [#allocation4], %s809_s10 }
 0x437   : > { %p937_p10 = pnand %p942_p9, %p1214_p6 }
 0x439   : > { %p938_p11 = pneg %p937_p10 }
 0x43b   : > { %1101 = dma.done.wait (%p938_p11), %s810_s12, 256  }
 0x43c   : > { %1103 = vsyncadd (%p938_p11), %s810_s12, 4294967040  ;;  %p19_p12 = scmp.ge.s32.totalorder %s1197_s11, 6   ;;  %s1441_s27 = smov %s1110_s28 }
 0x43d   : > { %s1442_s28 = smov %s1114_s29  ;;  %s1443_s29 = smov %s1208_s14 }
 0x43e   : > { %s1444_s30 = smov %s1197_s11  ;;  %21 = sbr.rel (!%p19_p12) target bundleno = 4 (0x4), region = 98 }
 0x443   :  { %816 = vsyncpa [#allocation3], 1 }
 0x444   :  { %818 = vsyncpa [#allocation3 + $0x1], 1 }
 0x445   :  { %819 = vsyncpa [#allocation4], 1 }
 0x446   :  { %821 = vsyncpa [#allocation4 + $0x1], 1 }

</bundles_post_ra>
